<compile_context>
chip_gen: v7x
topology: tpu7x:2x2x1
jax: 0.10.0
libtpu: 0.0.40
codegen_flags: <defaults>
</compile_context>

<pallas_src>
import math

import jax
import jax.numpy as jnp
from jax.experimental import pallas as pl
from jax.experimental.pallas import tpu as pltpu


_TARGET_TILE_BYTES = 2 * 1024 * 1024          # ~2 MiB per tile (per buffer)
_VMEM_LIMIT_BYTES = 32 * 1024 * 1024          # safe on v5e/v6e/v7x
_FALLBACK_MAX_TILE_BYTES = 12 * 1024 * 1024   # ceiling for degenerate fallback tiles


def _copy_kernel(x_ref, o_ref):
    # Pure identity copy of the current tile.
    o_ref[...] = x_ref[...]


def _resolve_shape(total: int, shape: tuple) -> tuple:
    """Resolve a single -1 in the target shape, PyTorch-style."""
    shape = tuple(int(s) for s in shape)
    n_neg = sum(1 for s in shape if s == -1)
    if n_neg > 1:
        raise ValueError("only one dimension may be -1 in the target shape")
    if n_neg == 1:
        known = math.prod(s for s in shape if s != -1)
        if known == 0 or total % known != 0:
            raise ValueError(f"cannot reshape {total} elements into {shape}")
        shape = tuple(total // known if s == -1 else s for s in shape)
    if math.prod(shape) != total:
        raise ValueError(f"cannot reshape {total} elements into {shape}")
    return shape


def _pick_width(total: int):
    """Widest lane-dense (multiple of 128) column count dividing `total`."""
    for w in (4096, 2048, 1024, 512, 256, 128):
        if total % w == 0:
            return w
    return None


def _pick_block_rows(rows: int, width: int, itemsize: int, target_tile_bytes: int) -> int:
    """Largest row-tile that fits the byte budget; multiple of 8 or full extent."""
    by_budget = max(1, target_tile_bytes // (width * itemsize))
    block_rows = max(8, (by_budget // 8) * 8)
    rows_ceil8 = ((rows + 7) // 8) * 8
    block_rows = min(block_rows, rows_ceil8)
    if block_rows >= rows:
        # Single block covering all rows -> use full extent (always legal).
        block_rows = rows
    return block_rows


def _tiled_copy(flat: jax.Array, block_rows: int, donate_input: bool) -> jax.Array:
    rows, width = flat.shape
    grid = (pl.cdiv(rows, block_rows),)
    kwargs = {}
    if donate_input:
        # Only valid if the caller donates the input buffer at the jit level.
        kwargs["input_output_aliases"] = {0: 0}
    return pl.pallas_call(
        _copy_kernel,
        out_shape=jax.ShapeDtypeStruct((rows, width), flat.dtype),
        grid=grid,
        in_specs=[pl.BlockSpec((block_rows, width), lambda i: (i, 0))],
        out_specs=pl.BlockSpec((block_rows, width), lambda i: (i, 0)),
        compiler_params=pltpu.CompilerParams(
            dimension_semantics=("parallel",),   # no cross-step dependence; lets v7x use both TCs
            vmem_limit_bytes=_VMEM_LIMIT_BYTES,
        ),
        **kwargs,
    )(flat)


def pallas_reshape(
    x: jax.Array,
    shape: tuple,
    *,
    donate_input: bool = False,
    target_tile_bytes: int = _TARGET_TILE_BYTES,
) -> jax.Array:
    """Reshape `x` to `shape`, with the element copy done in a Pallas kernel."""
    total = math.prod(x.shape)
    out_shape = _resolve_shape(total, shape)

    if total == 0:
        return jnp.reshape(x, out_shape)

    itemsize = jnp.dtype(x.dtype).itemsize

    # Choose a lane-dense 2-D slab view of the flattened buffer.
    width = _pick_width(total)
    if width is None:
        # Not divisible by 128: keep the original trailing dim as the (full-extent)
        # lane axis so we can still tile along rows; 1-D inputs become one row.
        width = x.shape[-1] if x.ndim >= 2 else total
    rows = total // width

    block_rows = _pick_block_rows(rows, width, itemsize, target_tile_bytes)
    if block_rows * width * itemsize > _FALLBACK_MAX_TILE_BYTES:
        # Degenerate case (huge, non-128-divisible trailing dim / 1-D input):
        # a single block would blow VMEM.  Reshape is metadata-only in XLA, so
        # degrade gracefully instead of failing.
        # TODO(synk): bulk + remainder split for huge non-lane-divisible 1-D inputs.
        return jnp.reshape(x, out_shape)

    # Metadata-only view for contiguous row-major inputs (PyTorch reshape order).
    flat = x.reshape(rows, width)
    copied = _tiled_copy(flat, block_rows, donate_input)

    # Metadata-only reshape to the requested target shape.
    return copied.reshape(out_shape)


if __name__ == "__main__":
    key = jax.random.PRNGKey(0)

    # Primary example matching the module's intent: flatten the spatial dims of
    # an NCHW activation, i.e. Reshape((2, 4, 256)) applied to (2, 4, 16, 16).
    x = jax.random.normal(key, (2, 4, 16, 16), dtype=jnp.float32)
    target_shape = (2, 4, 256)
    y = jax.block_until_ready(pallas_reshape(x, target_shape))
    ref = jnp.reshape(x, target_shape)
    assert y.shape == ref.shape and y.dtype == ref.dtype
    assert bool(jnp.all(y == ref))

    # -1 inference + non-128-divisible fallback path (full-extent last block).
    x2 = jax.random.normal(jax.random.PRNGKey(0), (3, 5, 7), dtype=jnp.float32)
    y2 = jax.block_until_ready(pallas_reshape(x2, (5, -1)))
    ref2 = jnp.reshape(x2, (5, 21))
    assert y2.shape == ref2.shape and bool(jnp.all(y2 == ref2))

    # Multi-step grid + masked partial last block (forced via a small tile budget).
    x3 = jax.random.normal(jax.random.PRNGKey(0), (3, 3, 64, 64), dtype=jnp.float32)
    y3 = jax.block_until_ready(
        pallas_reshape(x3, (9, -1), target_tile_bytes=64 * 1024)
    )
    ref3 = jnp.reshape(x3, (9, 4096))
    assert y3.shape == ref3.shape and bool(jnp.all(y3 == ref3))

    print("KERNEL_OK")
</pallas_src>

<mosaic_0001>
module attributes {stable_mosaic.version = 11 : i64} {
  func.func @_copy_kernel(%arg0: i32, %arg1: memref<1x2048xf32, #tpu.memory_space<vmem>>, %arg2: memref<1x2048xf32, #tpu.memory_space<vmem>>) attributes {dimension_semantics = [#tpu.dimension_semantics<parallel>], iteration_bounds = array<i64: 1>, scalar_prefetch = 0 : i64, scratch_operands = 0 : i64, tpu.core_type = #tpu.core_type<tc>, window_params = [{transform_indices = @transform_0, window_bounds = array<i64: 1, 2048>}, {transform_indices = @transform_1, window_bounds = array<i64: 1, 2048>}]} {
    %c0 = arith.constant 0 : index
    %c0_0 = arith.constant 0 : index
    %0 = vector.load %arg1[%c0, %c0_0] : memref<1x2048xf32, #tpu.memory_space<vmem>>, vector<1x2048xf32>
    %c0_1 = arith.constant 0 : index
    %c0_2 = arith.constant 0 : index
    %1 = vector.load %arg2[%c0_1, %c0_2] : memref<1x2048xf32, #tpu.memory_space<vmem>>, vector<1x2048xf32>
    tpu.vector_store %arg2[%c0_1, %c0_2], %0 {strides = array<i32>} : memref<1x2048xf32, #tpu.memory_space<vmem>>, vector<1x2048xf32>,
    return
  }
  func.func @transform_0(%arg0: i32) -> (i32, i32) {
    %c0_i32 = arith.constant 0 : i32
    %c0_i32_0 = arith.constant 0 : i32
    return %arg0, %c0_i32 : i32, i32
  }
  func.func @transform_1(%arg0: i32) -> (i32, i32) {
    %c0_i32 = arith.constant 0 : i32
    %c0_i32_0 = arith.constant 0 : i32
    return %arg0, %c0_i32 : i32, i32
  }
}

</mosaic_0001>

<bundles_post_ra>
// kernel: tpu_custom_call.1
= control target key start
LH: loop header
LB: loop body
LE: loop exit
PB: predicated region body
PF: predicated region fallthrough
CT: control target
= control target key end

     0   :  { %6 = vsyncpa [#allocation3], 0  ;;  %s126_s0 = inlined_call_operand.hbm [shape: f32[1,2048], index: 0, kind: input, shape index: {}]   ;;  %s127_s1 = inlined_call_operand.hbm [shape: f32[1,2048], index: 1, kind: output, shape index: {}]  }
   0x1   :  { %7 = vsyncpa [#allocation4], 0  ;;  %s90_s6 = smov [#allocation2]   ;;  %s42_s10 = scalar_lea.hbm %s126_s0, 256 }
   0x2   :  { %s14_s7 = sshll.u32 %s90_s6, 4  ;;  %p43_p0 = scmp.ne.s32.totalorder %s126_s0, %s42_s10  ;;  %s15_s7 = int_to_ptr.vmem [resolvable:$true] %s14_s7 }
   0x3   :  { %p46_p1 = scmp.lt.u32.totalorder %s42_s10, %s126_s0 }
   0x5   :  { %p48_p2 = pnand %p46_p1, %p43_p0 }
   0x7   :  { %51 = shalt.err (!%p48_p2)
}
   0x8   :  { %s52_s15 = scalar_lea.vmem %s15_s7, 256  ;;  %p57_p4 = scmp.lt.s32.totalorder %s15_s7, %s15_s7 }
   0x9   :  { %p53_p3 = scmp.ne.s32.totalorder %s15_s7, %s52_s15  ;;  %p58_p5 = scmp.lt.s32.totalorder %s52_s15, %s52_s15 }
   0xb   :  { %p59_p6 = por %p58_p5, %p57_p4 }
   0xd   :  { %p60_p7 = pnand %p59_p6, %p53_p3 }
   0xf   :  { %63 = shalt.err (!%p60_p7)
}
  0x10   :  { %17 = dma.hbm_to_vmem [thread:$0]  %s126_s0, 256, %s15_s7, [#allocation3]  }
  0x11   :  { %86 = dma.done.wait [#allocation3], 256  }
  0x12   :  { %87 = vsyncadd [#allocation3], 4294967040  ;;  %s91_s18 = smov [#allocation5]   ;;  %v21_v0 = vld [vmem:[#allocation2] sm:$0xff]  ;;  %v22_v1 = vld [vmem:[#allocation2 + $0x8] sm:$0xff] }
  0x13   :  { %s31_s19 = sshll.u32 %s91_s18, 4  ;;  %23 = vst [vmem:[#allocation5] sm:$0xff] %v21_v0  ;;  %24 = vst [vmem:[#allocation5 + $0x8] sm:$0xff] %v22_v1  ;;  %s32_s19 = int_to_ptr.vmem [resolvable:$true] %s31_s19 }
  0x14   :  { %s64_s20 = scalar_lea.vmem %s32_s19, 256  ;;  %p69_p9 = scmp.lt.s32.totalorder %s32_s19, %s32_s19 }
  0x15   :  { %p65_p8 = scmp.ne.s32.totalorder %s32_s19, %s64_s20  ;;  %p70_p10 = scmp.lt.s32.totalorder %s64_s20, %s64_s20 }
  0x17   :  { %p71_p11 = por %p70_p10, %p69_p9 }
  0x19   :  { %p72_p12 = pnand %p71_p11, %p65_p8 }
  0x1b   :  { %75 = shalt.err (!%p72_p12)
}
  0x1c   :  { %s76_s0 = scalar_lea.hbm %s127_s1, 256 }
  0x1d   :  { %p77_p13 = scmp.ne.s32.totalorder %s127_s1, %s76_s0  ;;  %p80_p0 = scmp.lt.u32.totalorder %s76_s0, %s127_s1 }
  0x1f   :  { %p82_p1 = pnand %p80_p0, %p77_p13 }
  0x21   :  { %85 = shalt.err (!%p82_p1)
}
  0x22   :  { %34 = dma.vmem_to_hbm [thread:$0]  %s32_s19, 256, %s127_s1, [#allocation4]  }
  0x23   :  { %88 = dma.done.wait [#allocation4], 256  }
  0x24   :  { %89 = vsyncadd [#allocation4], 4294967040 }
  0x25   :  { %38 = vsyncpa [#allocation3], 1 }
  0x26   :  { %39 = vsyncpa [#allocation4], 1 }

</bundles_post_ra>
